<compile_context>
chip_gen: v6e
topology: v6e:2x2x1
jax: 0.10.0
libtpu: 0.0.40
codegen_flags: <defaults>
</compile_context>

<pallas_src>
import functools

import jax
import jax.numpy as jnp
from jax.experimental import pallas as pl
from jax.experimental.pallas import tpu as pltpu

_MIB = 1024 * 1024


def _sdpa_kernel(q_ref, k_ref, v_ref, out_ref, attn_ref, *maybe_log_ref,
                 inv_temperature, matmul_dtype):
    log_ref = maybe_log_ref[0] if maybe_log_ref else None

    q = q_ref[...]                              # (bb, TQ, D)
    k = k_ref[...]                              # (bb, Lk, D)
    v = v_ref[...]                              # (bb, Lk, Dv)
    if matmul_dtype is not None:                # optional bf16 MXU feed for f32 inputs
        q = q.astype(matmul_dtype)
        k = k.astype(matmul_dtype)
    # Fold 1/temperature into q: one (TQ, D) multiply instead of an (TQ, Lk) divide
    # on the scores.  The weak-typed Python float keeps q in its native dtype.
    q = q * inv_temperature

    # scores = (q / T) @ k^T -- contract the last dims directly (no k.T slab / XLU
    # transpose; same einsum pattern as the reference Pallas flash-attention kernel).
    scores = jnp.einsum("bqd,bkd->bqk", q, k,
                        preferred_element_type=jnp.float32)   # (bb, TQ, Lk) f32

    # Numerically stable softmax / log_softmax along the key axis (torch dim=2).
    m = jnp.max(scores, axis=-1, keepdims=True)
    shifted = scores - m
    e = jnp.exp(shifted)
    denom = jnp.sum(e, axis=-1, keepdims=True)  # (bb, TQ, 1)
    inv_denom = 1.0 / denom                     # per-row divide only
    attn = e * inv_denom                        # broadcast multiply, (bb, TQ, Lk)

    # dropout(p=0.0) in the reference module is the identity.
    p = attn.astype(matmul_dtype if matmul_dtype is not None else v.dtype)
    out = jnp.einsum("bqk,bkd->bqd", p, v,
                     preferred_element_type=jnp.float32)      # (bb, TQ, Dv)

    out_ref[...] = out.astype(out_ref.dtype)
    attn_ref[...] = attn.astype(attn_ref.dtype)
    if log_ref is not None:
        log_ref[...] = (shifted - jnp.log(denom)).astype(log_ref.dtype)


def _vmem_capacity_bytes():
    """Physical VMEM of the current generation (128 MiB v5e/v6e, 64 MiB v7x)."""
    try:
        info = pltpu.get_tpu_info()
        cap = getattr(info, "vmem_capacity_bytes", None)
        if cap:
            return int(cap)
    except Exception:
        pass
    return 64 * _MIB   # conservative fallback (v7x-sized)


def _plan_tiles(B, Lq, Lk, D, Dv, in_bytes, prob_bytes, emit_log_attn):
    """Pick (batch_block, q_tile, kv_buffer_count, working_set_bytes, capacity)."""
    capacity = _vmem_capacity_bytes()
    # Working-set budget ~42% of physical VMEM: ~54 MiB on v5e/v6e, ~27 MiB on v7x.
    budget = max(16 * _MIB, int(capacity * 0.42))
    n_prob = 2 if emit_log_attn else 1

    def row_bytes(bb):
        # Double-buffered q / out / attn(/log_attn) block bytes per q-row, plus the
        # in-kernel f32 working set (~4 live (TQ, Lk) slabs + the f32 out slab).
        io = 2 * ((D + Dv) * in_bytes + n_prob * Lk * prob_bytes)
        f32_work = 4 * Lk * 4 + 4 * Dv
        return bb * (io + f32_work)

    kv_row = Lk * (D + Dv) * in_bytes          # one K/V copy for one batch row

    # Tiny ROI-head shapes: whole batch + all of Lq in a single block -> grid (1, 1);
    # removes per-grid-step overhead (~0.35 us/step) which dominates at these sizes.
    total_io = B * ((D + Dv) * Lq * in_bytes + n_prob * Lq * Lk * prob_bytes + kv_row)
    small_ws = 2 * B * kv_row + row_bytes(B) * Lq
    if total_io <= 2 * _MIB and small_ws <= budget:
        return B, Lq, 2, small_ws, capacity

    # General path: one batch row per block, q tiled.
    kv_buffers = 2
    if 2 * kv_row > budget // 2:
        kv_buffers = 1   # single-buffer resident K/V; exposed DMA only once per batch
    fixed = kv_buffers * kv_row
    avail = max(budget - fixed, 8 * row_bytes(1))
    tq = int(avail // row_bytes(1))
    tq = max(8, min((tq // 8) * 8, 1024))
    if tq >= Lq:
        tq = Lq                                # full-extent q block (no edge masking)
    working = fixed + row_bytes(1) * tq
    # TODO(synk): add an Lk-tiled online-softmax fallback for Lk so large that even a
    # single-buffered resident K/V exceeds VMEM (not needed for DeFRCN ROI-head shapes).
    return 1, tq, kv_buffers, working, capacity


def scaled_dot_product_attention(q, k, v, temperature, *,
                                 emit_log_attn=True, use_bf16_matmul=False):
    """q: (B, Lq, D), k: (B, Lk, D), v: (B, Lk, Dv) -> (output, attn[, log_attn])."""
    B, Lq, D = q.shape
    Bk, Lk, Dk = k.shape
    Bv, Lkv, Dv = v.shape
    assert B == Bk == Bv and D == Dk and Lk == Lkv

    prob_dtype = q.dtype  # attn / log_attn in the input dtype (torch semantics)
    in_bytes = jnp.dtype(q.dtype).itemsize
    prob_bytes = jnp.dtype(prob_dtype).itemsize

    bb, tq, kv_buffers, working, capacity = _plan_tiles(
        B, Lq, Lk, D, Dv, in_bytes, prob_bytes, emit_log_attn)

    matmul_dtype = None
    if use_bf16_matmul and q.dtype == jnp.float32:
        matmul_dtype = jnp.bfloat16

    kernel = functools.partial(_sdpa_kernel,
                               inv_temperature=1.0 / float(temperature),
                               matmul_dtype=matmul_dtype)

    grid = (B // bb, int(pl.cdiv(Lq, tq)))

    # K / V: full extent, constant block index across the q-tile axis so they stay
    # resident in VMEM.  Drop to a single buffer when VMEM is tight (v7x, large Lk).
    kv_kwargs = {} if kv_buffers == 2 else dict(pipeline_mode=pl.Buffered(1))
    in_specs = [
        pl.BlockSpec((bb, tq, D), lambda b, i: (b, i, 0)),
        pl.BlockSpec((bb, Lk, D), lambda b, i: (b, 0, 0), **kv_kwargs),
        pl.BlockSpec((bb, Lk, Dv), lambda b, i: (b, 0, 0), **kv_kwargs),
    ]
    out_specs = [
        pl.BlockSpec((bb, tq, Dv), lambda b, i: (b, i, 0)),
        pl.BlockSpec((bb, tq, Lk), lambda b, i: (b, i, 0)),
    ]
    out_shapes = [
        jax.ShapeDtypeStruct((B, Lq, Dv), q.dtype),      # output
        jax.ShapeDtypeStruct((B, Lq, Lk), prob_dtype),   # attn
    ]
    if emit_log_attn:
        out_specs.append(pl.BlockSpec((bb, tq, Lk), lambda b, i: (b, i, 0)))
        out_shapes.append(jax.ShapeDtypeStruct((B, Lq, Lk), prob_dtype))  # log_attn

    # Scoped VMEM limit: working set + 25% slack + 4 MiB, never above capacity-16 MiB
    # (<= 48 MiB on v7x's 64 MiB; up to 112 MiB on v5e/v6e's 128 MiB).
    hi = max(32 * _MIB, capacity - 16 * _MIB)
    vmem_limit = int(min(max(working * 5 // 4 + 4 * _MIB, 32 * _MIB), hi))

    results = pl.pallas_call(
        kernel,
        out_shape=tuple(out_shapes),
        grid_spec=pltpu.PrefetchScalarGridSpec(
            num_scalar_prefetch=0,
            grid=grid,
            in_specs=in_specs,
            out_specs=tuple(out_specs),
        ),
        compiler_params=pltpu.CompilerParams(
            # No cross-tile dependency anywhere -> both axes parallel (v7x megacore
            # can shard over B x q-tiles even when B == 1).
            dimension_semantics=("parallel", "parallel"),
            vmem_limit_bytes=vmem_limit,
        ),
    )(q, k, v)

    if emit_log_attn:
        out, attn, log_attn = results
        return out, attn, log_attn
    out, attn = results
    return out, attn


if __name__ == "__main__":
    key = jax.random.PRNGKey(0)

    def reference(q, k, v, temperature):
        scores = jnp.einsum("bqd,bkd->bqk", q.astype(jnp.float32),
                            k.astype(jnp.float32)) / temperature
        attn_r = jax.nn.softmax(scores, axis=2)
        log_attn_r = jax.nn.log_softmax(scores, axis=2)
        out_r = jnp.einsum("bqk,bkd->bqd", attn_r, v.astype(jnp.float32))
        return out_r, attn_r, log_attn_r

    # Case 1: shapes matching the module's typical use (batch=2, seq=8, hidden=32).
    # Exercises the tiny-shape path (whole batch in one block, grid (1, 1)).
    B, L, D = 2, 8, 32
    temperature = float(D) ** 0.5
    kq, kk, kv, key = jax.random.split(key, 4)
    q = jax.random.normal(kq, (B, L, D), dtype=jnp.float32)
    k = jax.random.normal(kk, (B, L, D), dtype=jnp.float32)
    v = jax.random.normal(kv, (B, L, D), dtype=jnp.float32)

    out, attn, log_attn = scaled_dot_product_attention(q, k, v, temperature)
    jax.block_until_ready((out, attn, log_attn))
    out_r, attn_r, log_r = reference(q, k, v, temperature)
    assert jnp.allclose(out, out_r, atol=1e-5, rtol=1e-4)
    assert jnp.allclose(attn, attn_r, atol=1e-6, rtol=1e-4)
    assert jnp.allclose(log_attn, log_r, atol=1e-5, rtol=1e-4)

    # Case 1b: log_attn-skipping path (writeback-bound v5e lever).
    out_na, attn_na = scaled_dot_product_attention(q, k, v, temperature,
                                                   emit_log_attn=False)
    jax.block_until_ready((out_na, attn_na))
    assert jnp.allclose(out_na, out_r, atol=1e-5, rtol=1e-4)
    assert jnp.allclose(attn_na, attn_r, atol=1e-6, rtol=1e-4)

    # Case 1c: bf16 MXU-feed path (loose tolerance; f32 accumulation kept).
    out_bf, attn_bf, _ = scaled_dot_product_attention(q, k, v, temperature,
                                                      use_bf16_matmul=True)
    jax.block_until_ready((out_bf, attn_bf))
    assert jnp.allclose(out_bf, out_r, atol=5e-2, rtol=5e-2)

    # Case 2: larger shapes -> per-batch-row blocks with q tiling (no pad / no slice).
    B2, Lq2, Lk2, D2 = 2, 600, 256, 64
    temperature2 = float(D2) ** 0.5
    kq, kk, kv, key = jax.random.split(key, 4)
    q2 = jax.random.normal(kq, (B2, Lq2, D2), dtype=jnp.float32)
    k2 = jax.random.normal(kk, (B2, Lk2, D2), dtype=jnp.float32)
    v2 = jax.random.normal(kv, (B2, Lk2, D2), dtype=jnp.float32)

    out2, attn2, log2 = scaled_dot_product_attention(q2, k2, v2, temperature2)
    jax.block_until_ready((out2, attn2, log2))
    out2_r, attn2_r, log2_r = reference(q2, k2, v2, temperature2)
    assert jnp.allclose(out2, out2_r, atol=1e-4, rtol=1e-4)
    assert jnp.allclose(attn2, attn2_r, atol=1e-6, rtol=1e-4)
    assert jnp.allclose(log2, log2_r, atol=1e-4, rtol=1e-4)

    print("KERNEL_OK")
</pallas_src>

<mosaic_0001>
module attributes {stable_mosaic.version = 11 : i64} {
  func.func @_sdpa_kernel(%arg0: i32, %arg1: i32, %arg2: memref<2x8x32xf32, #tpu.memory_space<vmem>>, %arg3: memref<2x8x32xf32, #tpu.memory_space<vmem>>, %arg4: memref<2x8x32xf32, #tpu.memory_space<vmem>>, %arg5: memref<2x8x32xf32, #tpu.memory_space<vmem>>, %arg6: memref<2x8x8xf32, #tpu.memory_space<vmem>>, %arg7: memref<2x8x8xf32, #tpu.memory_space<vmem>>) attributes {dimension_semantics = [#tpu.dimension_semantics<parallel>, #tpu.dimension_semantics<parallel>], iteration_bounds = array<i64: 1, 1>, scalar_prefetch = 0 : i64, scratch_operands = 0 : i64, tpu.core_type = #tpu.core_type<tc>, window_params = [{transform_indices = @transform_0, window_bounds = array<i64: 2, 8, 32>}, {transform_indices = @transform_1, window_bounds = array<i64: 2, 8, 32>}, {transform_indices = @transform_2, window_bounds = array<i64: 2, 8, 32>}, {transform_indices = @transform_3, window_bounds = array<i64: 2, 8, 32>}, {transform_indices = @transform_4, window_bounds = array<i64: 2, 8, 8>}, {transform_indices = @transform_5, window_bounds = array<i64: 2, 8, 8>}]} {
    %c0 = arith.constant 0 : index
    %c0_0 = arith.constant 0 : index
    %c0_1 = arith.constant 0 : index
    %0 = vector.load %arg2[%c0, %c0_0, %c0_1] : memref<2x8x32xf32, #tpu.memory_space<vmem>>, vector<2x8x32xf32>
    %c0_2 = arith.constant 0 : index
    %c0_3 = arith.constant 0 : index
    %c0_4 = arith.constant 0 : index
    %1 = vector.load %arg3[%c0_2, %c0_3, %c0_4] : memref<2x8x32xf32, #tpu.memory_space<vmem>>, vector<2x8x32xf32>
    %c0_5 = arith.constant 0 : index
    %c0_6 = arith.constant 0 : index
    %c0_7 = arith.constant 0 : index
    %2 = vector.load %arg4[%c0_5, %c0_6, %c0_7] : memref<2x8x32xf32, #tpu.memory_space<vmem>>, vector<2x8x32xf32>
    %cst = arith.constant 0.176776692 : f32
    %3 = vector.broadcast %cst : f32 to vector<2x8x32xf32>
    %4 = arith.mulf %0, %3 : vector<2x8x32xf32>
    "tpu.trace_start"() <{level = 10 : i32, message = "bqd,bkd->bqk"}> : () -> ()
    %cst_8 = arith.constant dense<0.000000e+00> : vector<2x8x8xf32>
    %5 = tpu.matmul %4, %1, %cst_8 {dimension_numbers = #tpu.dot_dimension_numbers<[2], [2], [1], [1], [0, 0, 0, 1, 1, 1], [0], [0]>} : vector<2x8x32xf32>, vector<2x8x32xf32>, vector<2x8x8xf32> -> vector<2x8x8xf32>
    "tpu.trace_stop"() : () -> ()
    %cst_9 = arith.constant dense<0xFF800000> : vector<2x8xf32>
    %6 = vector.multi_reduction <maximumf>, %5, %cst_9 [2] : vector<2x8x8xf32> to vector<2x8xf32>
    %7 = vector.shape_cast %6 : vector<2x8xf32> to vector<2x8x1xf32>
    %8 = vector.broadcast %7 : vector<2x8x1xf32> to vector<2x8x8xf32>
    %9 = arith.subf %5, %8 : vector<2x8x8xf32>
    %10 = math.exp %9 : vector<2x8x8xf32>
    %cst_10 = arith.constant dense<0.000000e+00> : vector<2x8xf32>
    %11 = vector.multi_reduction <add>, %10, %cst_10 [2] : vector<2x8x8xf32> to vector<2x8xf32>
    %12 = vector.shape_cast %11 : vector<2x8xf32> to vector<2x8x1xf32>
    %cst_11 = arith.constant 1.000000e+00 : f32
    %13 = vector.broadcast %cst_11 : f32 to vector<2x8x1xf32>
    %14 = arith.divf %13, %12 : vector<2x8x1xf32>
    %15 = vector.broadcast %14 : vector<2x8x1xf32> to vector<2x8x8xf32>
    %16 = arith.mulf %10, %15 : vector<2x8x8xf32>
    "tpu.trace_start"() <{level = 10 : i32, message = "bqk,bkd->bqd"}> : () -> ()
    %cst_12 = arith.constant dense<0.000000e+00> : vector<2x8x32xf32>
    %17 = tpu.matmul %16, %2, %cst_12 {dimension_numbers = #tpu.dot_dimension_numbers<[2], [1], [1], [2], [0, 0, 0, 1, 1, 2], [0], [0]>} : vector<2x8x8xf32>, vector<2x8x32xf32>, vector<2x8x32xf32> -> vector<2x8x32xf32>
    "tpu.trace_stop"() : () -> ()
    %c0_13 = arith.constant 0 : index
    %c0_14 = arith.constant 0 : index
    %c0_15 = arith.constant 0 : index
    %18 = vector.load %arg5[%c0_13, %c0_14, %c0_15] : memref<2x8x32xf32, #tpu.memory_space<vmem>>, vector<2x8x32xf32>
    tpu.vector_store %arg5[%c0_13, %c0_14, %c0_15], %17 {strides = array<i32>} : memref<2x8x32xf32, #tpu.memory_space<vmem>>, vector<2x8x32xf32>,
    %c0_16 = arith.constant 0 : index
    %c0_17 = arith.constant 0 : index
    %c0_18 = arith.constant 0 : index
    %19 = vector.load %arg6[%c0_16, %c0_17, %c0_18] : memref<2x8x8xf32, #tpu.memory_space<vmem>>, vector<2x8x8xf32>
    tpu.vector_store %arg6[%c0_16, %c0_17, %c0_18], %16 {strides = array<i32>} : memref<2x8x8xf32, #tpu.memory_space<vmem>>, vector<2x8x8xf32>,
    %20 = math.log %12 : vector<2x8x1xf32>
    %21 = vector.broadcast %20 : vector<2x8x1xf32> to vector<2x8x8xf32>
    %22 = arith.subf %9, %21 : vector<2x8x8xf32>
    %c0_19 = arith.constant 0 : index
    %c0_20 = arith.constant 0 : index
    %c0_21 = arith.constant 0 : index
    %23 = vector.load %arg7[%c0_19, %c0_20, %c0_21] : memref<2x8x8xf32, #tpu.memory_space<vmem>>, vector<2x8x8xf32>
    tpu.vector_store %arg7[%c0_19, %c0_20, %c0_21], %22 {strides = array<i32>} : memref<2x8x8xf32, #tpu.memory_space<vmem>>, vector<2x8x8xf32>,
    return
  }
  func.func @transform_0(%arg0: i32, %arg1: i32) -> (i32, i32, i32) {
    %c0_i32 = arith.constant 0 : i32
    %c0_i32_0 = arith.constant 0 : i32
    return %arg0, %arg1, %c0_i32 : i32, i32, i32
  }
  func.func @transform_1(%arg0: i32, %arg1: i32) -> (i32, i32, i32) {
    %c0_i32 = arith.constant 0 : i32
    %c0_i32_0 = arith.constant 0 : i32
    %c0_i32_1 = arith.constant 0 : i32
    return %arg0, %c0_i32, %c0_i32_0 : i32, i32, i32
  }
  func.func @transform_2(%arg0: i32, %arg1: i32) -> (i32, i32, i32) {
    %c0_i32 = arith.constant 0 : i32
    %c0_i32_0 = arith.constant 0 : i32
    %c0_i32_1 = arith.constant 0 : i32
    return %arg0, %c0_i32, %c0_i32_0 : i32, i32, i32
  }
  func.func @transform_3(%arg0: i32, %arg1: i32) -> (i32, i32, i32) {
    %c0_i32 = arith.constant 0 : i32
    %c0_i32_0 = arith.constant 0 : i32
    return %arg0, %arg1, %c0_i32 : i32, i32, i32
  }
  func.func @transform_4(%arg0: i32, %arg1: i32) -> (i32, i32, i32) {
    %c0_i32 = arith.constant 0 : i32
    %c0_i32_0 = arith.constant 0 : i32
    return %arg0, %arg1, %c0_i32 : i32, i32, i32
  }
  func.func @transform_5(%arg0: i32, %arg1: i32) -> (i32, i32, i32) {
    %c0_i32 = arith.constant 0 : i32
    %c0_i32_0 = arith.constant 0 : i32
    return %arg0, %arg1, %c0_i32 : i32, i32, i32
  }
}

</mosaic_0001>

<bundles_post_ra>
// kernel: tpu_custom_call.1
= control target key start
LH: loop header
LB: loop body
LE: loop exit
PB: predicated region body
PF: predicated region fallthrough
CT: control target
= control target key end

     0   :  { %11 = vsyncpa [#allocation3], 0  ;;  %s733_s0 = inlined_call_operand.hbm [shape: f32[2,8,32], index: 0, kind: input, shape index: {}]   ;;  %s734_s1 = inlined_call_operand.hbm [shape: f32[2,8,32], index: 1, kind: input, shape index: {}]   ;;  %s735_s2 = inlined_call_operand.hbm [shape: f32[2,8,32], index: 2, kind: input, shape index: {}]   ;;  %s736_s3 = inlined_call_operand.hbm [shape: f32[2,8,32], index: 3, kind: output, shape index: {0}]   ;;  %s737_s4 = inlined_call_operand.hbm [shape: f32[2,8,8], index: 4, kind: output, shape index: {1}]   ;;  %s738_s5 = inlined_call_operand.hbm [shape: f32[2,8,8], index: 5, kind: output, shape index: {2}]  }
   0x1   :  { %12 = vsyncpa [#allocation6], 0 }
   0x2   :  { %13 = vsyncpa [#allocation4], 0 }
   0x3   :  { %14 = vsyncpa [#allocation10], 0  ;;  %s637_s18 = smov [#allocation5]   ;;  %s638_s20 = smov [#allocation2]  }
   0x4   :  { %s32_s19 = sshll.u32 %s637_s18, 4  ;;  %s20_s21 = sshll.u32 %s638_s20, 4  ;;  %s33_s19 = int_to_ptr.vmem [resolvable:$true] %s32_s19  ;;  %s21_s21 = int_to_ptr.vmem [resolvable:$true] %s20_s21 }
   0x5   :  { %s517_s22 = scalar_lea.vmem %s33_s19, 256  ;;  %p522_p1 = scmp.lt.s32.totalorder %s33_s19, %s33_s19 }
   0x6   :  { %p518_p0 = scmp.ne.s32.totalorder %s33_s19, %s517_s22  ;;  %p523_p2 = scmp.lt.s32.totalorder %s517_s22, %s517_s22 }
   0x8   :  { %p524_p3 = por %p523_p2, %p522_p1 }
   0xa   :  { %p525_p4 = pnand %p524_p3, %p518_p0 }
   0xc   :  { %528 = shalt.err (!%p525_p4)
}
   0xd   :  { %s639_s23 = smov 128   ;;  %s640_s24 = smov 8  }
   0xe   :  { %38 = dma.hbm_to_vmem [thread:$0]  %s734_s1, 256, %s33_s19, [#allocation6], %s639_s23, %s639_s23, %s640_s24  }
   0xf   :  { %s537_s27 = scalar_lea.vmem %s21_s21, 256  ;;  %p542_p6 = scmp.lt.s32.totalorder %s21_s21, %s21_s21 }
  0x10   :  { %p538_p5 = scmp.ne.s32.totalorder %s21_s21, %s537_s27  ;;  %p543_p7 = scmp.lt.s32.totalorder %s537_s27, %s537_s27 }
  0x12   :  { %p544_p8 = por %p543_p7, %p542_p6 }
  0x14   :  { %p545_p9 = pnand %p544_p8, %p538_p5 }
  0x16   :  { %548 = shalt.err (!%p545_p9)
}
  0x17   :  { %26 = dma.hbm_to_vmem [thread:$0]  %s733_s0, 256, %s21_s21, [#allocation3], %s639_s23, %s639_s23, %s640_s24  }
  0x18   :  { %s641_s30 = smov [#allocation7]  }
  0x19   :  { %s44_s6 = sshll.u32 %s641_s30, 4  ;;  %s45_s6 = int_to_ptr.vmem [resolvable:$true] %s44_s6 }
  0x1a   :  { %s557_s7 = scalar_lea.vmem %s45_s6, 256  ;;  %p562_p11 = scmp.lt.s32.totalorder %s45_s6, %s45_s6 }
  0x1b   :  { %p558_p10 = scmp.ne.s32.totalorder %s45_s6, %s557_s7  ;;  %p563_p12 = scmp.lt.s32.totalorder %s557_s7, %s557_s7 }
  0x1d   :  { %p564_p13 = por %p563_p12, %p562_p11 }
  0x1f   :  { %p565_p0 = pnand %p564_p13, %p558_p10 }
  0x21   :  { %568 = shalt.err (!%p565_p0)
}
  0x22   :  { %50 = dma.hbm_to_vmem [thread:$0]  %s735_s2, 256, %s45_s6, [#allocation6], %s639_s23, %s639_s23, %s640_s24  }
  0x23   :  { %629 = dma.done.wait [#allocation3], 256  }
  0x24   :  { %630 = vsyncadd [#allocation3], 4294967040 }
  0x25   :  { %631 = dma.done.wait [#allocation6], 512  }
  0x26   :  { %632 = vsyncadd [#allocation6], 4294966784  ;;  %v642_v0 = vmov 0.0   ;;  %vm643_vm0 = vmmov 0   ;;  %vm68_vm1 = vcmask 261120   ;;  %v62_v1 = vld [vmem:[#allocation5] sm:$0xff] }
  0x27   :  { %467 = vmatprep.subr.mxu0 %v642_v0  ;;  %472 = vmatprep.subr.mxu1 %v642_v0  ;;  %v63_v2 = vld [vmem:[#allocation5 + $0x8] sm:$0xff]  ;;  %v60_v3 = vld [vmem:[#allocation2] sm:$0xff]  ;;  %v61_v5 = vld [vmem:[#allocation2 + $0x8] sm:$0xff]  ;;  %vm221_vm2 = vcmask 64512   ;;  %s644_s0 = smov [#allocation9]  }
  0x28   :  { %469 = vmatprep.mubr.msk.f32.mxu0 %vm643_vm0, %v642_v0  ;;  %474 = vmatprep.mubr.msk.f32.mxu1 %vm643_vm0, %v642_v0  ;;  %v66_v4 = vmul.f32 0.17677669, %v60_v3  ;;  %v67_v6 = vmul.f32 0.17677669, %v61_v5  ;;  %v64_v23 = vld [vmem:[#allocation7] sm:$0xff]  ;;  %v65_v24 = vld [vmem:[#allocation7 + $0x8] sm:$0xff] }
  0x29   :  { %468 = vmatpush3.xpose.msk.msra.mxu0 %vm68_vm1, %v62_v1  ;;  %473 = vmatpush3.xpose.msk.msra.mxu1 %vm68_vm1, %v63_v2  ;;  %s421_s2 = sshll.u32 %s644_s0, 4  ;;  %s422_s2 = int_to_ptr.vmem [resolvable:$true] %s421_s2 }
  0x2a   :  { %477 = vmatprep.subr.mxu0 %v642_v0  ;;  %482 = vmatprep.subr.mxu1 %v642_v0  ;;  %s569_s9 = scalar_lea.vmem %s422_s2, 256  ;;  %p574_p2 = scmp.lt.s32.totalorder %s422_s2, %s422_s2 }
  0x2b   :  { %p570_p1 = scmp.ne.s32.totalorder %s422_s2, %s569_s9  ;;  %p575_p3 = scmp.lt.s32.totalorder %s569_s9, %s569_s9 }
  0x2c   :  { %470 = vmatmul.mubr.msk.f32.vlgmr.msra.gmra.mxu0 %vm68_vm1, %v66_v4  ;;  %475 = vmatmul.mubr.msk.f32.vlgmr.msra.gmra.mxu1 %vm68_vm1, %v67_v6 }
  0x2d   :  { %479 = vmatprep.mubr.msk.f32.mxu0 %vm643_vm0, %v642_v0  ;;  %484 = vmatprep.mubr.msk.f32.mxu1 %vm643_vm0, %v642_v0  ;;  %p576_p4 = por %p575_p3, %p574_p2 }
  0x2e   :  { %478 = vmatpush3.msra.mxu0 %v64_v23  ;;  %483 = vmatpush3.msra.mxu1 %v65_v24 }
  0x2f   :  { %p577_p5 = pnand %p576_p4, %p570_p1 }
  0xec   :  { %v141_v7 = vpop.f32.mrf.mxu0  ;;  %v217_v8 = vpop.f32.mrf.mxu1 }
  0xed   :  { %v222_v9 = vsel %vm221_vm2, %v141_v7, -inf  ;;  %v225_v12 = vsel %vm221_vm2, %v217_v8, -inf }
  0xee   :  { %223 = vmax.xlane.f32.xlu0 %v222_v9  ;;  %v471_v10 = vpop.f32.mrf.mxu0  ;;  %v476_v11 = vpop.f32.mrf.mxu1 }
  0xf2   :  { %226 = vmax.xlane.f32.xlu0 %v225_v12 }
 0x177   :  { %v224_v13 = vpop.xlane.xlu0 %223 }
 0x178   :  { %v228_v14 = vsub.f32 %v141_v7, %v224_v13 }
 0x17a   :  { %v230_v15 = vmul.f32 1.442695, %v228_v14 }
 0x17b   :  { %v227_v16 = vpop.xlane.xlu0 %226 }
 0x17c   :  { %497 = vpow2.f32 %v230_v15  ;;  %v229_v17 = vsub.f32 %v217_v8, %v227_v16 }
 0x17e   :  { %v232_v18 = vmul.f32 1.442695, %v229_v17 }
 0x180   :  { %499 = vpow2.f32 %v232_v18 }
 0x189   :  { %v498_v19 = vpop.eup %497 }
 0x18a   :  { %v234_v20 = vsel %vm221_vm2, %v498_v19, 0.0 }
 0x18b   :  { %235 = vadd.xlane.f32.xlu1 %v234_v20 }
 0x18d   :  { %v500_v21 = vpop.eup %499 }
 0x18e   :  { %v237_v22 = vsel %vm221_vm2, %v500_v21, 0.0 }
 0x18f   :  { %238 = vadd.xlane.f32.xlu1 %v237_v22 }
 0x214   :  { %v236_v25 = vpop.xlane.xlu1 %235 }
 0x215   :  { %501 = vrcp.f32 %v236_v25 }
 0x216   :  { %503 = vlog2.f32 %v236_v25 }
 0x218   :  { %v239_v26 = vpop.xlane.xlu1 %238 }
 0x219   :  { %505 = vrcp.f32 %v239_v26 }
 0x21a   :  { %507 = vlog2.f32 %v239_v26 }
 0x222   :  { %v502_v27 = vpop.eup %501 }
 0x223   :  { %v504_v28 = vpop.eup %503  ;;  %v244_v29 = vmul.f32 %v502_v27, %v498_v19 }
 0x224   :  { %v397_v30 = vmul.f32 0.6931472, %v504_v28 }
 0x225   :  { %480 = vmatmul.mubr.msk.f32.vlgmr.msra.gmra.mxu0 %vm221_vm2, %v244_v29  ;;  %394 = vst.msk [vmem:[#allocation9] sm:$0xff] %vm221_vm2, %v244_v29 }
 0x226   :  { %v506_v31 = vpop.eup %505  ;;  %v400_v32 = vsub.f32 %v228_v14, %v397_v30 }
 0x227   :  { %v508_v33 = vpop.eup %507  ;;  %v245_v34 = vmul.f32 %v506_v31, %v500_v21 }
 0x228   :  { %402 = vst.msk [vmem:[#allocation11] sm:$0xff] %vm221_vm2, %v400_v32  ;;  %v399_v35 = vmul.f32 0.6931472, %v508_v33 }
 0x229   :  { %485 = vmatmul.mubr.msk.f32.vlgmr.msra.gmra.mxu1 %vm221_vm2, %v245_v34  ;;  %395 = vst.msk [vmem:[#allocation9 + $0x8] sm:$0xff] %vm221_vm2, %v245_v34 }
 0x22a   :  { %v401_v36 = vsub.f32 %v229_v17, %v399_v35 }
 0x22c   :  { %403 = vst.msk [vmem:[#allocation11 + $0x8] sm:$0xff] %vm221_vm2, %v401_v36 }
 0x22d   :  { %580 = shalt.err (!%p577_p5)
}
 0x22e   :  { %427 = dma.vmem_to_hbm [thread:$0]  %s422_s2, 256, %s737_s4, [#allocation10], %s639_s23, %s639_s23, %s640_s24  }
 0x22f   :  { %s645_s12 = smov [#allocation11]  }
 0x230   :  { %s433_s13 = sshll.u32 %s645_s12, 4  ;;  %s434_s13 = int_to_ptr.vmem [resolvable:$true] %s433_s13 }
 0x231   :  { %s589_s14 = scalar_lea.vmem %s434_s13, 256  ;;  %p594_p7 = scmp.lt.s32.totalorder %s434_s13, %s434_s13 }
 0x232   :  { %p590_p6 = scmp.ne.s32.totalorder %s434_s13, %s589_s14  ;;  %p595_p8 = scmp.lt.s32.totalorder %s589_s14, %s589_s14 }
 0x234   :  { %p596_p9 = por %p595_p8, %p594_p7 }
 0x236   :  { %p597_p10 = pnand %p596_p9, %p590_p6 }
 0x238   :  { %600 = shalt.err (!%p597_p10)
}
 0x239   :  { %439 = dma.vmem_to_hbm [thread:$0]  %s434_s13, 256, %s738_s5, [#allocation10], %s639_s23, %s639_s23, %s640_s24  }
 0x23a   :  { %s646_s17 = smov [#allocation8]  }
 0x23b   :  { %s409_s4 = sshll.u32 %s646_s17, 4  ;;  %s410_s4 = int_to_ptr.vmem [resolvable:$true] %s409_s4 }
 0x23c   :  { %s609_s18 = scalar_lea.vmem %s410_s4, 256  ;;  %p614_p12 = scmp.lt.s32.totalorder %s410_s4, %s410_s4 }
 0x23d   :  { %p610_p11 = scmp.ne.s32.totalorder %s410_s4, %s609_s18  ;;  %p615_p13 = scmp.lt.s32.totalorder %s609_s18, %s609_s18 }
 0x23f   :  { %p616_p0 = por %p615_p13, %p614_p12 }
 0x241   :  { %p617_p1 = pnand %p616_p0, %p610_p11 }
 0x2e5   :  { %v315_v37 = vpop.f32.mrf.mxu0 }
 0x2e6   :  { %392 = vst.msk [vmem:[#allocation8] sm:$0xff] %vm68_vm1, %v315_v37 }
 0x2e7   :  { %v481_v38 = vpop.f32.mrf.mxu0 }
 0x2e9   :  { %v388_v39 = vpop.f32.mrf.mxu1 }
 0x2ea   :  { %393 = vst.msk [vmem:[#allocation8 + $0x8] sm:$0xff] %vm68_vm1, %v388_v39 }
 0x2eb   :  { %v486_v40 = vpop.f32.mrf.mxu1 }
 0x2ec   :  { %620 = shalt.err (!%p617_p1)
}
 0x2ed   :  { %415 = dma.vmem_to_hbm [thread:$0]  %s410_s4, 256, %s736_s3, [#allocation4], %s639_s23, %s639_s23, %s640_s24  }
 0x2ee   :  { %633 = dma.done.wait [#allocation4], 256  }
 0x2ef   :  { %634 = vsyncadd [#allocation4], 4294967040 }
 0x2f0   :  { %635 = dma.done.wait [#allocation10], 512  }
 0x2f1   :  { %636 = vsyncadd [#allocation10], 4294966784 }
 0x2f2   :  { %449 = vsyncpa [#allocation3], 1 }
 0x2f3   :  { %450 = vsyncpa [#allocation6], 1 }
 0x2f4   :  { %451 = vsyncpa [#allocation4], 1 }
 0x2f5   :  { %452 = vsyncpa [#allocation10], 1 }

</bundles_post_ra>
